<compile_context>
chip_gen: v5e
topology: v5e:2x2
jax: 0.10.0
libtpu: 0.0.40
codegen_flags: <defaults>
</compile_context>

<pallas_src>
import jax
import jax.numpy as jnp
from jax.experimental import pallas as pl
from jax.experimental.pallas import tpu as pltpu


# --------------------------------------------------------------------------
# Hardware / tiling helpers
# --------------------------------------------------------------------------
def _vmem_capacity_bytes():
    """Physical per-TensorCore VMEM; conservative v7x default on failure."""
    try:
        info = pltpu.get_tpu_info()
        cap = int(getattr(info, "vmem_capacity_bytes"))
        if cap > 0:
            return cap
    except Exception:
        pass
    return 64 << 20


def _choose_bt(B, bytes_per_image, target_bytes, vmem_budget):
    """Largest Bt dividing B such that the slab hits the size targets."""
    bpi = max(1, bytes_per_image)
    bt_cap = max(1, min(B, target_bytes // bpi))
    bt_cap = int(min(bt_cap, max(1, vmem_budget // (4 * bpi))))
    # When slabs stay large, keep >= 4 grid steps so both v7x TensorCores run
    # an overlapped double-buffered pipeline (not one slab each).
    if B >= 4 and bpi * max(1, B // 4) >= (512 << 10):
        bt_cap = min(bt_cap, max(1, B // 4))
    divisors = [d for d in range(1, bt_cap + 1) if B % d == 0]
    if not divisors:
        return 1
    # Prefer an even grid length when slabs are large (balance 2 TCs on v7x).
    if bpi * divisors[-1] >= (512 << 10):
        even = [d for d in divisors if (B // d) % 2 == 0]
        if even:
            return even[-1]
    return divisors[-1]


# --------------------------------------------------------------------------
# Fused path: one grid step = Bt full images (pool -> MLP -> scale in-kernel)
# --------------------------------------------------------------------------
def _make_fused_kernel(true_hw):
    inv_hw = 1.0 / float(true_hw)

    def kernel(x_ref, w1t_ref, b1_ref, w2t_ref, b2_ref, o_ref):
        x = x_ref[...]                                               # (Bt, C, HW), input dtype

        # AdaptiveAvgPool2d(1): f32-accumulated lane reduction (XLU; free under DMA slack).
        pooled = jnp.sum(x.astype(jnp.float32), axis=-1) * inv_hw    # (Bt, C) f32

        # conv1 (1x1) + bias + ReLU
        h = jnp.dot(pooled, w1t_ref[...],
                    preferred_element_type=jnp.float32) + b1_ref[...]  # (Bt, Cr)
        h = jnp.maximum(h, 0.0)

        # conv2 (1x1) + bias
        s = jnp.dot(h, w2t_ref[...],
                    preferred_element_type=jnp.float32) + b2_ref[...]  # (Bt, C)

        # Hardsigmoid: clip(x/6 + 0.5, 0, 1)
        gate = jnp.clip(s * (1.0 / 6.0) + 0.5, 0.0, 1.0)              # (Bt, C) f32

        # Scale identity in the INPUT dtype (no full-slab f32 materialization).
        o_ref[...] = x * gate.astype(x.dtype)[:, :, None]

    return kernel


def _fused_path(x_flat, w1t, b1_row, w2t, b2_row, HW, *, target_bytes, fused_budget):
    B, C, _ = x_flat.shape
    Cr = w1t.shape[1]
    dtype = x_flat.dtype
    itemsize = jnp.dtype(dtype).itemsize

    bytes_per_image = C * HW * itemsize
    param_bytes = 4 * (w1t.size + w2t.size + b1_row.size + b2_row.size)

    Bt = _choose_bt(B, bytes_per_image, target_bytes, fused_budget)
    grid = (B // Bt,)
    slab_bytes = Bt * bytes_per_image
    # f32 temp for the pooled-sum cast only matters for sub-32-bit inputs.
    temp_bytes = Bt * C * HW * 4 if itemsize < 4 else 0
    vmem_limit = int(min(fused_budget,
                         max(8 << 20,
                             4 * slab_bytes + temp_bytes + 2 * param_bytes + (2 << 20))))

    return pl.pallas_call(
        _make_fused_kernel(HW),
        out_shape=jax.ShapeDtypeStruct((B, C, HW), dtype),
        grid_spec=pltpu.PrefetchScalarGridSpec(
            num_scalar_prefetch=0,
            grid=grid,
            in_specs=[
                pl.BlockSpec((Bt, C, HW), lambda b: (b, 0, 0)),  # x slab (full C, HW)
                pl.BlockSpec((C, Cr), lambda b: (0, 0)),         # w1^T
                pl.BlockSpec((1, Cr), lambda b: (0, 0)),         # b1 row
                pl.BlockSpec((Cr, C), lambda b: (0, 0)),         # w2^T
                pl.BlockSpec((1, C), lambda b: (0, 0)),          # b2 row
            ],
            out_specs=pl.BlockSpec((Bt, C, HW), lambda b: (b, 0, 0)),
        ),
        compiler_params=pltpu.CompilerParams(
            dimension_semantics=("parallel",),
            vmem_limit_bytes=vmem_limit),
    )(x_flat, w1t, b1_row, w2t, b2_row)


# --------------------------------------------------------------------------
# Two-phase path: HW-tiled pooling kernel -> tiny XLA MLP -> HW-tiled scale.
# Used when a single double-buffered image does not fit the fused VMEM budget
# (e.g. large C*HW on v7x's 64 MiB VMEM).
# --------------------------------------------------------------------------
def _two_phase_path(x_flat, w1t, b1_row, w2t, b2_row, HW, *, vmem_cap, tile_bytes=None):
    B, C, _ = x_flat.shape
    dtype = x_flat.dtype
    itemsize = jnp.dtype(dtype).itemsize

    if tile_bytes is None:
        tile_bytes = 1 << 20                     # ~1 MiB tiles: HBM-roofline sweet spot
    thw = tile_bytes // max(1, C * itemsize)
    if thw >= HW:
        thw = HW                                 # full-dim block (always legal)
    else:
        thw = max(128, (thw // 128) * 128)       # lane-aligned tile
    n_t = -(-HW // thw)
    needs_mask = (HW % thw) != 0
    phase_vmem = int(min(vmem_cap // 2, 32 << 20))

    # ---- Phase 1: per-channel sums, HW as "arbitrary" reduction axis -------
    def pool_kernel(x_ref, sum_ref):
        t = pl.program_id(1)

        @pl.when(t == 0)
        def _():
            sum_ref[...] = jnp.zeros_like(sum_ref)

        xf = x_ref[...].astype(jnp.float32)                       # (1, C, thw)
        if needs_mask:
            col = jax.lax.broadcasted_iota(jnp.int32, xf.shape, 2) + t * thw
            xf = jnp.where(col < HW, xf, 0.0)                     # mask OOB tail
        sum_ref[...] += jnp.sum(xf, axis=-1, keepdims=True)

    sums = pl.pallas_call(
        pool_kernel,
        out_shape=jax.ShapeDtypeStruct((B, C, 1), jnp.float32),
        grid_spec=pltpu.PrefetchScalarGridSpec(
            num_scalar_prefetch=0,
            grid=(B, n_t),
            in_specs=[pl.BlockSpec((1, C, thw), lambda b, t: (b, 0, t))],
            out_specs=pl.BlockSpec((1, C, 1), lambda b, t: (b, 0, 0)),
        ),
        compiler_params=pltpu.CompilerParams(
            dimension_semantics=("parallel", "arbitrary"),
            vmem_limit_bytes=phase_vmem),
    )(x_flat)

    # ---- Phase 2: tiny excitation MLP + hardsigmoid in plain XLA -----------
    pooled = sums[:, :, 0] * (1.0 / float(HW))                    # (B, C) f32
    h = jnp.maximum(pooled @ w1t + b1_row, 0.0)                   # (B, Cr)
    s = h @ w2t + b2_row                                          # (B, C)
    gate = jnp.clip(s * (1.0 / 6.0) + 0.5, 0.0, 1.0)              # (B, C) f32
    gate = gate.astype(dtype).reshape(B, C, 1)

    # ---- Phase 3: HW-tiled scale by the per-channel gate --------------------
    def scale_kernel(x_ref, g_ref, o_ref):
        o_ref[...] = x_ref[...] * g_ref[...]

    return pl.pallas_call(
        scale_kernel,
        out_shape=jax.ShapeDtypeStruct((B, C, HW), dtype),
        grid_spec=pltpu.PrefetchScalarGridSpec(
            num_scalar_prefetch=0,
            grid=(B, n_t),
            in_specs=[pl.BlockSpec((1, C, thw), lambda b, t: (b, 0, t)),
                      pl.BlockSpec((1, C, 1), lambda b, t: (b, 0, 0))],
            out_specs=pl.BlockSpec((1, C, thw), lambda b, t: (b, 0, t)),
        ),
        compiler_params=pltpu.CompilerParams(
            dimension_semantics=("parallel", "parallel"),
            vmem_limit_bytes=phase_vmem),
    )(x_flat, gate)


# --------------------------------------------------------------------------
# Public wrapper
# --------------------------------------------------------------------------
def es_se_module(x_nchw, w1, b1, w2, b2, *, force_two_phase=False, tile_bytes=None):
    """x_nchw: (B, C, H, W).  w1: (Cr, C), b1: (Cr,), w2: (C, Cr), b2: (C,)."""
    B, C, H, W = x_nchw.shape
    HW = H * W
    Cr = w1.shape[0]
    itemsize = jnp.dtype(x_nchw.dtype).itemsize

    x_flat = x_nchw.reshape(B, C, HW)

    # Lane-friendly parameter layouts (free plumbing in the wrapper).
    w1t = jnp.asarray(w1).T.astype(jnp.float32)           # (C, Cr)
    w2t = jnp.asarray(w2).T.astype(jnp.float32)           # (Cr, C)
    b1_row = jnp.asarray(b1).reshape(1, Cr).astype(jnp.float32)
    b2_row = jnp.asarray(b2).reshape(1, C).astype(jnp.float32)

    vmem_cap = _vmem_capacity_bytes()
    fused_budget = int(min(vmem_cap // 2, 48 << 20))       # ~32 MiB v7x, 48 MiB v5e/v6e
    target_bytes = (4 << 20) if vmem_cap >= (128 << 20) else (2 << 20)

    bytes_per_image = C * HW * itemsize
    param_bytes = 4 * (w1t.size + w2t.size + b1_row.size + b2_row.size)
    temp_bytes = C * HW * 4 if itemsize < 4 else 0
    fused_need = 4 * bytes_per_image + temp_bytes + 2 * param_bytes + (2 << 20)

    if force_two_phase or fused_need > fused_budget:
        out_flat = _two_phase_path(x_flat, w1t, b1_row, w2t, b2_row, HW,
                                   vmem_cap=vmem_cap, tile_bytes=tile_bytes)
    else:
        out_flat = _fused_path(x_flat, w1t, b1_row, w2t, b2_row, HW,
                               target_bytes=target_bytes, fused_budget=fused_budget)
    return out_flat.reshape(B, C, H, W)


def _reference(x, w1, b1, w2, b2):
    """Pure-JAX reference mirroring the PyTorch forward."""
    pooled = jnp.mean(x, axis=(2, 3), keepdims=True)               # (B,C,1,1)
    h = jnp.einsum("rc,bcij->brij", w1, pooled) + b1[None, :, None, None]
    h = jnp.maximum(h, 0.0)
    s = jnp.einsum("cr,brij->bcij", w2, h) + b2[None, :, None, None]
    gate = jnp.clip(s / 6.0 + 0.5, 0.0, 1.0)
    return x * gate


if __name__ == "__main__":
    def make_inputs(key, B, C, H, W, reduction=4):
        Cr = C // reduction
        kx, k1, k2, k3, k4 = jax.random.split(key, 5)
        x = jax.random.normal(kx, (B, C, H, W), dtype=jnp.float32)
        w1 = jax.random.normal(k1, (Cr, C), dtype=jnp.float32) * 0.1
        b1 = jax.random.normal(k2, (Cr,), dtype=jnp.float32) * 0.1
        w2 = jax.random.normal(k3, (C, Cr), dtype=jnp.float32) * 0.1
        b2 = jax.random.normal(k4, (C,), dtype=jnp.float32) * 0.1
        return x, w1, b1, w2, b2

    # 1) Fused path, lane-dense spatial (H*W = 256 = 2*128).
    x, w1, b1, w2, b2 = make_inputs(jax.random.PRNGKey(0), B=2, C=8, H=16, W=16)
    out = jax.block_until_ready(es_se_module(x, w1, b1, w2, b2))
    ref = _reference(x, w1, b1, w2, b2)
    assert out.shape == x.shape
    assert jnp.allclose(out, ref, atol=1e-5, rtol=1e-5), "fused (lane-dense) mismatch"

    # 2) Fused path, H*W NOT a multiple of 128 (no wrapper pad/slice; masked tail vst).
    x, w1, b1, w2, b2 = make_inputs(jax.random.PRNGKey(1), B=2, C=8, H=20, W=20)
    out = jax.block_until_ready(es_se_module(x, w1, b1, w2, b2))
    ref = _reference(x, w1, b1, w2, b2)
    assert jnp.allclose(out, ref, atol=1e-5, rtol=1e-5), "fused (ragged HW) mismatch"

    # 3) Two-phase fallback path (forced, tiny tiles so the masked HW tail is exercised).
    out = jax.block_until_ready(
        es_se_module(x, w1, b1, w2, b2, force_two_phase=True, tile_bytes=4096))
    assert jnp.allclose(out, ref, atol=1e-5, rtol=1e-5), "two-phase mismatch"

    print("KERNEL_OK")
</pallas_src>

<mosaic_0001>
module attributes {stable_mosaic.version = 11 : i64} {
  func.func @kernel(%arg0: i32, %arg1: memref<2x8x256xf32, #tpu.memory_space<vmem>>, %arg2: memref<8x2xf32, #tpu.memory_space<vmem>>, %arg3: memref<1x2xf32, #tpu.memory_space<vmem>>, %arg4: memref<2x8xf32, #tpu.memory_space<vmem>>, %arg5: memref<1x8xf32, #tpu.memory_space<vmem>>, %arg6: memref<2x8x256xf32, #tpu.memory_space<vmem>>) attributes {dimension_semantics = [#tpu.dimension_semantics<parallel>], iteration_bounds = array<i64: 1>, scalar_prefetch = 0 : i64, scratch_operands = 0 : i64, tpu.core_type = #tpu.core_type<tc>, window_params = [{transform_indices = @transform_0, window_bounds = array<i64: 2, 8, 256>}, {pipeline_mode = #tpu.pipeline_mode<synchronous>, transform_indices = @transform_1, window_bounds = array<i64: 8, 2>}, {pipeline_mode = #tpu.pipeline_mode<synchronous>, transform_indices = @transform_2, window_bounds = array<i64: 1, 2>}, {pipeline_mode = #tpu.pipeline_mode<synchronous>, transform_indices = @transform_3, window_bounds = array<i64: 2, 8>}, {pipeline_mode = #tpu.pipeline_mode<synchronous>, transform_indices = @transform_4, window_bounds = array<i64: 1, 8>}, {transform_indices = @transform_5, window_bounds = array<i64: 2, 8, 256>}]} {
    %c0 = arith.constant 0 : index
    %c0_0 = arith.constant 0 : index
    %c0_1 = arith.constant 0 : index
    %0 = vector.load %arg1[%c0, %c0_0, %c0_1] : memref<2x8x256xf32, #tpu.memory_space<vmem>>, vector<2x8x256xf32>
    %cst = arith.constant dense<0.000000e+00> : vector<2x8xf32>
    %1 = vector.multi_reduction <add>, %0, %cst [2] : vector<2x8x256xf32> to vector<2x8xf32>
    %cst_2 = arith.constant 3.906250e-03 : f32
    %2 = vector.broadcast %cst_2 : f32 to vector<2x8xf32>
    %3 = arith.mulf %1, %2 : vector<2x8xf32>
    %c0_3 = arith.constant 0 : index
    %c0_4 = arith.constant 0 : index
    %4 = vector.load %arg2[%c0_3, %c0_4] : memref<8x2xf32, #tpu.memory_space<vmem>>, vector<8x2xf32>
    %cst_5 = arith.constant dense<0.000000e+00> : vector<2x2xf32>
    %5 = tpu.matmul %3, %4, %cst_5 {dimension_numbers = #tpu.dot_dimension_numbers<[1], [0], [0], [1], [0, 0, 1, 1], [], []>} : vector<2x8xf32>, vector<8x2xf32>, vector<2x2xf32> -> vector<2x2xf32>
    %c0_6 = arith.constant 0 : index
    %c0_7 = arith.constant 0 : index
    %6 = vector.load %arg3[%c0_6, %c0_7] : memref<1x2xf32, #tpu.memory_space<vmem>>, vector<1x2xf32>
    %7 = vector.broadcast %6 : vector<1x2xf32> to vector<2x2xf32>
    %8 = arith.addf %5, %7 : vector<2x2xf32>
    %cst_8 = arith.constant 0.000000e+00 : f32
    %9 = vector.broadcast %cst_8 : f32 to vector<2x2xf32>
    %10 = arith.maximumf %8, %9 : vector<2x2xf32>
    %c0_9 = arith.constant 0 : index
    %c0_10 = arith.constant 0 : index
    %11 = vector.load %arg4[%c0_9, %c0_10] : memref<2x8xf32, #tpu.memory_space<vmem>>, vector<2x8xf32>
    %cst_11 = arith.constant dense<0.000000e+00> : vector<2x8xf32>
    %12 = tpu.matmul %10, %11, %cst_11 {dimension_numbers = #tpu.dot_dimension_numbers<[1], [0], [0], [1], [0, 0, 1, 1], [], []>} : vector<2x2xf32>, vector<2x8xf32>, vector<2x8xf32> -> vector<2x8xf32>
    %c0_12 = arith.constant 0 : index
    %c0_13 = arith.constant 0 : index
    %13 = vector.load %arg5[%c0_12, %c0_13] : memref<1x8xf32, #tpu.memory_space<vmem>>, vector<1x8xf32>
    %14 = vector.broadcast %13 : vector<1x8xf32> to vector<2x8xf32>
    %15 = arith.addf %12, %14 : vector<2x8xf32>
    %cst_14 = arith.constant 0.166666672 : f32
    %16 = vector.broadcast %cst_14 : f32 to vector<2x8xf32>
    %17 = arith.mulf %15, %16 : vector<2x8xf32>
    %cst_15 = arith.constant 5.000000e-01 : f32
    %18 = vector.broadcast %cst_15 : f32 to vector<2x8xf32>
    %19 = arith.addf %17, %18 : vector<2x8xf32>
    %cst_16 = arith.constant 0.000000e+00 : f32
    %cst_17 = arith.constant 1.000000e+00 : f32
    %20 = vector.broadcast %cst_16 : f32 to vector<2x8xf32>
    %21 = arith.maximumf %20, %19 : vector<2x8xf32>
    %22 = vector.broadcast %cst_17 : f32 to vector<2x8xf32>
    %23 = arith.minimumf %22, %21 : vector<2x8xf32>
    %24 = vector.shape_cast %23 : vector<2x8xf32> to vector<2x8x1xf32>
    %25 = vector.broadcast %24 : vector<2x8x1xf32> to vector<2x8x256xf32>
    %26 = arith.mulf %0, %25 : vector<2x8x256xf32>
    %c0_18 = arith.constant 0 : index
    %c0_19 = arith.constant 0 : index
    %c0_20 = arith.constant 0 : index
    %27 = vector.load %arg6[%c0_18, %c0_19, %c0_20] : memref<2x8x256xf32, #tpu.memory_space<vmem>>, vector<2x8x256xf32>
    tpu.vector_store %arg6[%c0_18, %c0_19, %c0_20], %26 {strides = array<i32>} : memref<2x8x256xf32, #tpu.memory_space<vmem>>, vector<2x8x256xf32>,
    return
  }
  func.func @transform_0(%arg0: i32) -> (i32, i32, i32) {
    %c0_i32 = arith.constant 0 : i32
    %c0_i32_0 = arith.constant 0 : i32
    %c0_i32_1 = arith.constant 0 : i32
    return %arg0, %c0_i32, %c0_i32_0 : i32, i32, i32
  }
  func.func @transform_1(%arg0: i32) -> (i32, i32) {
    %c0_i32 = arith.constant 0 : i32
    %c0_i32_0 = arith.constant 0 : i32
    %c0_i32_1 = arith.constant 0 : i32
    return %c0_i32, %c0_i32_0 : i32, i32
  }
  func.func @transform_2(%arg0: i32) -> (i32, i32) {
    %c0_i32 = arith.constant 0 : i32
    %c0_i32_0 = arith.constant 0 : i32
    %c0_i32_1 = arith.constant 0 : i32
    return %c0_i32, %c0_i32_0 : i32, i32
  }
  func.func @transform_3(%arg0: i32) -> (i32, i32) {
    %c0_i32 = arith.constant 0 : i32
    %c0_i32_0 = arith.constant 0 : i32
    %c0_i32_1 = arith.constant 0 : i32
    return %c0_i32, %c0_i32_0 : i32, i32
  }
  func.func @transform_4(%arg0: i32) -> (i32, i32) {
    %c0_i32 = arith.constant 0 : i32
    %c0_i32_0 = arith.constant 0 : i32
    %c0_i32_1 = arith.constant 0 : i32
    return %c0_i32, %c0_i32_0 : i32, i32
  }
  func.func @transform_5(%arg0: i32) -> (i32, i32, i32) {
    %c0_i32 = arith.constant 0 : i32
    %c0_i32_0 = arith.constant 0 : i32
    %c0_i32_1 = arith.constant 0 : i32
    return %arg0, %c0_i32, %c0_i32_0 : i32, i32, i32
  }
}

</mosaic_0001>

<bundles_post_ra>
// kernel: tpu_custom_call.1
= control target key start
LH: loop header
LB: loop body
LE: loop exit
PB: predicated region body
PF: predicated region fallthrough
CT: control target
= control target key end

     0   :  { %10 = vsyncpa [#allocation3], 0  ;;  %s285_s0 = inlined_call_operand.hbm [shape: f32[2,8,256], index: 0, kind: input, shape index: {}]   ;;  %s286_s1 = inlined_call_operand.vmem [shape: f32[8,2], index: 1, kind: input, shape index: {}]   ;;  %s287_s2 = inlined_call_operand.vmem [shape: f32[1,2], index: 2, kind: input, shape index: {}]   ;;  %s288_s3 = inlined_call_operand.vmem [shape: f32[2,8], index: 3, kind: input, shape index: {}]   ;;  %s289_s4 = inlined_call_operand.vmem [shape: f32[1,8], index: 4, kind: input, shape index: {}]   ;;  %s290_s5 = inlined_call_operand.hbm [shape: f32[2,8,256], index: 5, kind: output, shape index: {}]  }
   0x1   :  { %11 = vsyncpa [#allocation4], 0  ;;  %s16_s20 = sshll.u32 %s285_s0, 4  ;;  %s227_s21 = smov [#allocation2]   ;;  %s17_s20 = int_to_ptr.hbm [resolvable:$true] %s16_s20 }
   0x2   :  { %s18_s22 = sshll.u32 %s227_s21, 4  ;;  %s228_s23 = smov 256   ;;  %s19_s22 = int_to_ptr.vmem [resolvable:$true] %s18_s22 }
   0x3   :  { %s229_s24 = smov 16  }
   0x4   :  { %24 = dma.hbm_to_vmem [thread:$0]  %s17_s20, 512, %s19_s22, [#allocation3], %s228_s23, %s228_s23, %s229_s24  }
   0x5   :  { %223 = dma.done.wait [#allocation3], 512  }
   0x6   :  { %224 = vsyncadd [#allocation3], 4294966784  ;;  %v37_v0 = vld [vmem:[#allocation2] sm:$0xff]  ;;  %v38_v1 = vld [vmem:[#allocation2 + $0x8] sm:$0xff]  ;;  %v56_v8 = vlaneseq  ;;  %vm60_vm0 = vcmask 1041409   ;;  %vm62_vm1 = vcmask 64512  }
   0x7   :  { %v41_v2 = vadd.f32 %v38_v1, %v37_v0  ;;  %v39_v3 = vld [vmem:[#allocation2 + $0x10] sm:$0xff]  ;;  %v40_v4 = vld [vmem:[#allocation2 + $0x18] sm:$0xff]  ;;  %v49_v6 = vld [vmem:[%s286_s1] sm:$0xff]  ;;  %vm95_vm2 = vcmask 1041408   ;;  %vm91_vm3 = vcmask 15360  }
   0x8   :  { %v44_v5 = vadd.f32 %v40_v4, %v39_v3  ;;  %80 = vmatpush.msra.mxu0 %v49_v6  ;;  %v57_v9 = vand.u32 127, %v56_v8  ;;  %v86_v16 = vld [vmem:[%s288_s3] sm:$0x3]  ;;  %v125_v21 = vshrl.u32 %v56_v8, 7 }
   0x9   :  { %42 = vadd.xlane.f32.xlu0 %v41_v2  ;;  %165 = vmatpush.msk.msra.mxu1 %vm95_vm2, %v86_v16  ;;  %v173_v17 = vld [vmem:[%s287_s2] ss:$0 sm:$0xff]  ;;  %s230_s2 = smov [#allocation5]  }
   0xa   :  { %171 = vset.pattern.permute.xlu1 %v125_v21  ;;  %172 = vset.pattern.permute.xlu0 %v125_v21  ;;  %v174_v22 = vld [vmem:[%s289_s4] ss:$0 sm:$0xff]  ;;  %s149_s3 = sshll.u32 %s230_s2, 4  ;;  %s151_s4 = sshll.u32 %s290_s5, 4  ;;  %s150_s3 = int_to_ptr.vmem [resolvable:$true] %s149_s3  ;;  %s152_s4 = int_to_ptr.hbm [resolvable:$true] %s151_s4 }
  0x11   :  { %45 = vadd.xlane.f32.xlu0 %v44_v5 }
  0x7c   :  { %v43_v7 = vpop.xlane.xlu0 %42 }
  0x7d   :  { %v47_v10 = vmul.f32 0.00390625, %v43_v7 }
  0x7f   :  { %v58_v13 = vperm.slane %v47_v10, %v57_v9 }
  0x84   :  { %v46_v11 = vpop.xlane.xlu0 %45 }
  0x85   :  { %v48_v12 = vmul.f32 0.00390625, %v46_v11 }
  0x87   :  { %v59_v14 = vperm.slane %v48_v12, %v57_v9 }
  0x89   :  { %v61_v15 = vsel %vm60_vm0, %v59_v14, %v58_v13 }
  0x8a   :  { %164 = vmatmul.msk.f32.vlgmr.msra.gmra.mxu0 %vm62_vm1, %v61_v15 }
 0x107   :  { %v82_v18 = vpop.f32.mrf.mxu0 }
 0x108   :  { %v83_v19 = vadd.f32 %v173_v17, %v82_v18 }
 0x10a   :  { %v85_v20 = vmax.f32 %v83_v19, 0.0 }
 0x10c   :  { %166 = vmatmul.msk.f32.vlgmr.msra.gmra.mxu1 %vm91_vm3, %v85_v20 }
 0x189   :  { %v116_v23 = vpop.f32.mrf.mxu1 }
 0x18a   :  { %v117_v24 = vadd.f32 %v174_v22, %v116_v23 }
 0x18c   :  { %v119_v25 = vmul.f32 0.16666667, %v117_v24 }
 0x18e   :  { %v120_v26 = vadd.f32 0.5, %v119_v25 }
 0x190   :  { %v121_v27 = vmax.f32 %v120_v26, 0.0 }
 0x192   :  { %v122_v28 = vmin.f32 %v121_v27, 1.0 }
 0x194   :  { %v123_v29 = vperm.slane %v122_v28, 0  ;;  %v130_v30 = vperm.slane %v122_v28, 1 }
 0x196   :  { %128 = vperm.xlu1 %171, %v123_v29  }
 0x19e   :  { %135 = vperm.xlu1 %171, %v130_v30  }
 0x208   :  { %v129_v31 = vpop.permute.xlu1 %128 }
 0x209   :  { %v137_v32 = vmul.f32 %v129_v31, %v37_v0  ;;  %v138_v33 = vmul.f32 %v129_v31, %v38_v1 }
 0x20b   :  { %141 = vst [vmem:[#allocation5] sm:$0xff] %v137_v32 }
 0x20c   :  { %142 = vst [vmem:[#allocation5 + $0x8] sm:$0xff] %v138_v33 }
 0x210   :  { %v136_v34 = vpop.permute.xlu1 %135 }
 0x211   :  { %v139_v35 = vmul.f32 %v136_v34, %v39_v3  ;;  %v140_v36 = vmul.f32 %v136_v34, %v40_v4 }
 0x213   :  { %143 = vst [vmem:[#allocation5 + $0x10] sm:$0xff] %v139_v35 }
 0x214   :  { %144 = vst [vmem:[#allocation5 + $0x18] sm:$0xff] %v140_v36 }
 0x215   :  { %157 = dma.vmem_to_hbm [thread:$0]  %s150_s3, 512, %s152_s4, [#allocation4], %s228_s23, %s228_s23, %s229_s24  }
 0x216   :  { %225 = dma.done.wait [#allocation4], 512  }
 0x217   :  { %226 = vsyncadd [#allocation4], 4294966784 }
 0x218   :  { %162 = vsyncpa [#allocation3], 1 }
 0x219   :  { %163 = vsyncpa [#allocation4], 1 }

</bundles_post_ra>
